<compile_context>
chip_gen: v7x
topology: tpu7x:2x2x1
jax: 0.10.0
libtpu: 0.0.40
codegen_flags: <defaults>
</compile_context>

<pallas_src>
import functools

import jax
import jax.numpy as jnp
from jax.experimental import pallas as pl
from jax.experimental.pallas import tpu as pltpu

EPS = 1e-5


# ---------------------------------------------------------------------------
# Kernel
# ---------------------------------------------------------------------------
def resblock_kernel(x_ref, w_ref, bn_ref, out_ref, *, C, H, inv_nhw):
    """Fused ResBlock.

    x_ref  : (N*H, W*C)        rows ordered (n, y); cols ordered (w, c)
    w_ref  : (2, 3*W*C, W*C)   banded conv weights; rows (dy, xi, c), cols (xo, co)
    bn_ref : (4, W*C)          [gamma1; beta1; gamma2; beta2], tiled per column
    out_ref: (N*H, W*C)
    """
    NH, WC = x_ref.shape

    # Per-channel fold + broadcast matrix (includes 1/(N*H*W)), built in-kernel.
    ci = jax.lax.broadcasted_iota(jnp.int32, (WC, WC), 0) % C
    cj = jax.lax.broadcasted_iota(jnp.int32, (WC, WC), 1) % C
    spread = jnp.where(ci == cj, inv_nhw, 0.0).astype(jnp.float32)

    # Masks zeroing rows whose dy-shifted source lies in a different image
    # (also covers the global top/bottom rows -> emulates zero H-padding).
    row = jax.lax.broadcasted_iota(jnp.int32, (NH, WC), 0)
    mask_top = (row % H != 0).astype(jnp.float32)       # dy=-1 tap invalid at y==0
    mask_bot = (row % H != H - 1).astype(jnp.float32)   # dy=+1 tap invalid at y==H-1

    def conv3x3_bn(v, w, g, b):
        z = jnp.zeros((1, WC), jnp.float32)
        up = jnp.concatenate([z, v[:-1, :]], axis=0) * mask_top   # row y-1
        dn = jnp.concatenate([v[1:, :], z], axis=0) * mask_bot    # row y+1
        lhs = jnp.concatenate([up, v, dn], axis=1)                # (NH, 3*WC)

        # single MXU matmul per conv (K = 3*W*C, shared across images)
        acc = jnp.dot(lhs, w, preferred_element_type=jnp.float32)

        # two-pass BN (training-mode biased stats over N, H, W)
        mean = jnp.dot(jnp.sum(acc, axis=0, keepdims=True), spread,
                       preferred_element_type=jnp.float32)        # (1, WC)
        centered = acc - mean
        var = jnp.dot(jnp.sum(centered * centered, axis=0, keepdims=True), spread,
                      preferred_element_type=jnp.float32)         # (1, WC)
        return centered * (g * jax.lax.rsqrt(var + EPS)) + b

    x = x_ref[...]
    bn = bn_ref[...]
    h1 = jnp.maximum(conv3x3_bn(x, w_ref[0], bn[0:1, :], bn[1:2, :]), 0.0)
    y2 = conv3x3_bn(h1, w_ref[1], bn[2:3, :], bn[3:4, :]) + x     # + residual
    out_ref[...] = jnp.maximum(y2, 0.0)


# ---------------------------------------------------------------------------
# One-time wrapper-side weight / layout preparation (call OUTSIDE the hot path)
# ---------------------------------------------------------------------------
def make_banded_weight(w_oihw, W):
    """PyTorch (Cout, Cin, 3, 3) -> banded RHS (3*W*Cin, W*Cout), batch-free.

    Row order (dy, xi, c); col order (xo, co).  Entry = w[co, c, dy, dx] with
    dx = xi - xo + 1, nonzero only when |xi - xo| <= 1; the clipped band at
    xo = 0 / W-1 implements the zero W-padding.
    """
    Cout, Cin, KH, KW = w_oihw.shape
    w_t = jnp.transpose(w_oihw, (2, 3, 1, 0)).astype(jnp.float32)  # (dy, dx, c, co)
    xi = jnp.arange(W)
    xo = jnp.arange(W)
    band = jnp.zeros((KH, W, Cin, W, Cout), jnp.float32)           # (dy, xi, c, xo, co)
    for dx in range(KW):
        m = (xi[:, None] == (xo[None, :] + dx - 1)).astype(jnp.float32)  # (W, W)
        band = band + m[None, :, None, :, None] * w_t[:, dx][:, None, :, None, :]
    return band.reshape(KH * W * Cin, W * Cout)


def prepare_resblock_params(params, W):
    """Precompute packed kernel inputs once (not per forward call)."""
    w1, g1, b1, w2, g2, b2 = params
    C = w1.shape[0]
    assert w1.shape[0] == w1.shape[1], "downsample=None requires Cin == Cout"
    WC = W * C

    w_stacked = jnp.stack([make_banded_weight(w1, W),
                           make_banded_weight(w2, W)], axis=0)     # (2, 3*WC, WC)

    def tile_col(v):  # column j = w*C + c uses v[c]
        return jnp.tile(v.astype(jnp.float32), W).reshape(1, WC)

    bn_stacked = jnp.concatenate(
        [tile_col(g1), tile_col(b1), tile_col(g2), tile_col(b2)], axis=0)  # (4, WC)
    return w_stacked, bn_stacked


# ---------------------------------------------------------------------------
# Forward (jit this; takes precomputed packed params)
# ---------------------------------------------------------------------------
def resblock_forward(x_nchw, w_stacked, bn_stacked):
    """ResBlock forward. x_nchw: (N, C, H, W) like PyTorch."""
    N, C, H, W = x_nchw.shape
    NH, WC = N * H, W * C
    assert w_stacked.shape == (2, 3 * WC, WC)
    # NOTE: lane dim is W*C; full-lane (unmasked) stores need W*C % 128 == 0.
    # Smaller shapes still run correctly via masked partial stores.

    # (N, C, H, W) -> (N, H, W, C) -> (N*H, W*C)   lane order (w, c)
    x2d = jnp.transpose(x_nchw, (0, 2, 3, 1)).reshape(NH, WC).astype(jnp.float32)

    kernel = functools.partial(resblock_kernel, C=C, H=H,
                               inv_nhw=1.0 / float(N * H * W))

    flops = 2 * (2 * NH * (3 * WC) * WC) + 4 * (2 * WC * WC)
    bytes_accessed = 4 * (x2d.size + w_stacked.size + bn_stacked.size + NH * WC)
    cost = pl.CostEstimate(flops=int(flops), transcendentals=2 * WC,
                           bytes_accessed=int(bytes_accessed))

    out2d = pl.pallas_call(
        kernel,
        out_shape=jax.ShapeDtypeStruct((NH, WC), jnp.float32),
        grid=(1,),
        in_specs=[
            pl.BlockSpec((NH, WC), lambda i: (0, 0)),
            pl.BlockSpec((2, 3 * WC, WC), lambda i: (0, 0, 0)),
            pl.BlockSpec((4, WC), lambda i: (0, 0)),
        ],
        out_specs=pl.BlockSpec((NH, WC), lambda i: (0, 0)),
        compiler_params=pltpu.CompilerParams(
            dimension_semantics=("arbitrary",),
            vmem_limit_bytes=32 * 1024 * 1024),
        cost_estimate=cost,
    )(x2d, w_stacked, bn_stacked)

    # (N*H, W*C) -> (N, H, W, C) -> (N, C, H, W)
    return jnp.transpose(out2d.reshape(N, H, W, C), (0, 3, 1, 2))


# ---------------------------------------------------------------------------
# Pure-JAX reference (lax conv) for correctness check
# ---------------------------------------------------------------------------
def resblock_reference(x_nchw, params):
    w1, g1, b1, w2, g2, b2 = params
    x = jnp.transpose(x_nchw, (0, 2, 3, 1)).astype(jnp.float32)

    def conv(v, w_oihw):
        w_hwio = jnp.transpose(w_oihw, (2, 3, 1, 0))
        return jax.lax.conv_general_dilated(
            v, w_hwio, (1, 1), "SAME",
            dimension_numbers=("NHWC", "HWIO", "NHWC"))

    def bn(v, g, b):
        m = jnp.mean(v, axis=(0, 1, 2))
        var = jnp.mean((v - m) ** 2, axis=(0, 1, 2))
        return (v - m) * g * jax.lax.rsqrt(var + EPS) + b

    h = jnp.maximum(bn(conv(x, w1), g1, b1), 0.0)
    o = jnp.maximum(bn(conv(h, w2), g2, b2) + x, 0.0)
    return jnp.transpose(o, (0, 3, 1, 2))


if __name__ == "__main__":
    key = jax.random.PRNGKey(0)
    N, C, H, W = 2, 4, 16, 16
    ks = jax.random.split(key, 7)

    x = jax.random.normal(ks[0], (N, C, H, W), jnp.float32)

    # Deterministic synthetic parameters (PyTorch layouts).
    w1 = jax.random.normal(ks[1], (C, C, 3, 3), jnp.float32) * 0.1   # conv1.weight
    w2 = jax.random.normal(ks[2], (C, C, 3, 3), jnp.float32) * 0.1   # conv2.weight
    g1 = 1.0 + 0.1 * jax.random.normal(ks[3], (C,), jnp.float32)     # bn1.weight
    b1 = 0.1 * jax.random.normal(ks[4], (C,), jnp.float32)           # bn1.bias
    g2 = 1.0 + 0.1 * jax.random.normal(ks[5], (C,), jnp.float32)     # bn2.weight
    b2 = 0.1 * jax.random.normal(ks[6], (C,), jnp.float32)           # bn2.bias
    params = (w1, g1, b1, w2, g2, b2)

    # One-time prep OUTSIDE the per-call jit (perf review item 2).
    w_stacked, bn_stacked = jax.block_until_ready(
        prepare_resblock_params(params, W))

    fwd = jax.jit(resblock_forward)
    out = jax.block_until_ready(fwd(x, w_stacked, bn_stacked))
    ref = jax.block_until_ready(resblock_reference(x, params))

    assert out.shape == (N, C, H, W)
    assert jnp.allclose(out, ref, atol=1e-4, rtol=1e-4), "mismatch vs reference"
    print("KERNEL_OK")
</pallas_src>

<mosaic_0001>
module attributes {stable_mosaic.version = 11 : i64} {
  func.func @resblock_kernel(%arg0: i32, %arg1: memref<32x64xf32, #tpu.memory_space<vmem>>, %arg2: memref<2x192x64xf32, #tpu.memory_space<vmem>>, %arg3: memref<4x64xf32, #tpu.memory_space<vmem>>, %arg4: memref<32x64xf32, #tpu.memory_space<vmem>>) attributes {dimension_semantics = [#tpu.dimension_semantics<arbitrary>], iteration_bounds = array<i64: 1>, scalar_prefetch = 0 : i64, scratch_operands = 0 : i64, tpu.core_type = #tpu.core_type<tc>, window_params = [{pipeline_mode = #tpu.pipeline_mode<synchronous>, transform_indices = @transform_0, window_bounds = array<i64: 32, 64>}, {pipeline_mode = #tpu.pipeline_mode<synchronous>, transform_indices = @transform_1, window_bounds = array<i64: 2, 192, 64>}, {pipeline_mode = #tpu.pipeline_mode<synchronous>, transform_indices = @transform_2, window_bounds = array<i64: 4, 64>}, {pipeline_mode = #tpu.pipeline_mode<synchronous>, transform_indices = @transform_3, window_bounds = array<i64: 32, 64>}]} {
    %0 = tpu.iota {dimensions = array<i32: 0>} : vector<64x64xi32>
    %c4_i32 = arith.constant 4 : i32
    %c0_i32 = arith.constant 0 : i32
    %1 = arith.cmpi eq, %c4_i32, %c0_i32 : i32
    %c1_i32 = arith.constant 1 : i32
    %2 = arith.select %1, %c1_i32, %c4_i32 : i32
    %3 = vector.broadcast %2 : i32 to vector<64x64xi32>
    %4 = arith.remsi %0, %3 : vector<64x64xi32>
    %c0_i32_0 = arith.constant 0 : i32
    %5 = vector.broadcast %c0_i32_0 : i32 to vector<64x64xi32>
    %6 = arith.cmpi ne, %4, %5 : vector<64x64xi32>
    %c0_i32_1 = arith.constant 0 : i32
    %7 = vector.broadcast %c0_i32_1 : i32 to vector<64x64xi32>
    %8 = arith.cmpi slt, %4, %7 : vector<64x64xi32>
    %c0_i32_2 = arith.constant 0 : i32
    %9 = arith.cmpi slt, %2, %c0_i32_2 : i32
    %10 = vector.broadcast %9 : i1 to vector<64x64xi1>
    %11 = vector.broadcast %10 : vector<64x64xi1> to vector<64x64xi1>
    %12 = arith.xori %8, %11 : vector<64x64xi1>
    %13 = arith.andi %12, %6 : vector<64x64xi1>
    %14 = vector.broadcast %2 : i32 to vector<64x64xi32>
    %15 = arith.addi %4, %14 : vector<64x64xi32>
    %16 = arith.select %13, %15, %4 : vector<64x64xi1>, vector<64x64xi32>
    %17 = tpu.iota {dimensions = array<i32: 1>} : vector<64x64xi32>
    %c4_i32_3 = arith.constant 4 : i32
    %c0_i32_4 = arith.constant 0 : i32
    %18 = arith.cmpi eq, %c4_i32_3, %c0_i32_4 : i32
    %c1_i32_5 = arith.constant 1 : i32
    %19 = arith.select %18, %c1_i32_5, %c4_i32_3 : i32
    %20 = vector.broadcast %19 : i32 to vector<64x64xi32>
    %21 = arith.remsi %17, %20 : vector<64x64xi32>
    %c0_i32_6 = arith.constant 0 : i32
    %22 = vector.broadcast %c0_i32_6 : i32 to vector<64x64xi32>
    %23 = arith.cmpi ne, %21, %22 : vector<64x64xi32>
    %c0_i32_7 = arith.constant 0 : i32
    %24 = vector.broadcast %c0_i32_7 : i32 to vector<64x64xi32>
    %25 = arith.cmpi slt, %21, %24 : vector<64x64xi32>
    %c0_i32_8 = arith.constant 0 : i32
    %26 = arith.cmpi slt, %19, %c0_i32_8 : i32
    %27 = vector.broadcast %26 : i1 to vector<64x64xi1>
    %28 = vector.broadcast %27 : vector<64x64xi1> to vector<64x64xi1>
    %29 = arith.xori %25, %28 : vector<64x64xi1>
    %30 = arith.andi %29, %23 : vector<64x64xi1>
    %31 = vector.broadcast %19 : i32 to vector<64x64xi32>
    %32 = arith.addi %21, %31 : vector<64x64xi32>
    %33 = arith.select %30, %32, %21 : vector<64x64xi1>, vector<64x64xi32>
    %34 = arith.cmpi eq, %16, %33 : vector<64x64xi32>
    %cst = arith.constant 0.001953125 : f32
    %cst_9 = arith.constant 0.000000e+00 : f32
    %35 = vector.broadcast %cst : f32 to vector<64x64xf32>
    %36 = vector.broadcast %cst_9 : f32 to vector<64x64xf32>
    %37 = arith.select %34, %35, %36 : vector<64x64xi1>, vector<64x64xf32>
    %38 = tpu.iota {dimensions = array<i32: 0>} : vector<32x64xi32>
    %c16_i32 = arith.constant 16 : i32
    %c0_i32_10 = arith.constant 0 : i32
    %39 = arith.cmpi eq, %c16_i32, %c0_i32_10 : i32
    %c1_i32_11 = arith.constant 1 : i32
    %40 = arith.select %39, %c1_i32_11, %c16_i32 : i32
    %41 = vector.broadcast %40 : i32 to vector<32x64xi32>
    %42 = arith.remsi %38, %41 : vector<32x64xi32>
    %c0_i32_12 = arith.constant 0 : i32
    %43 = vector.broadcast %c0_i32_12 : i32 to vector<32x64xi32>
    %44 = arith.cmpi ne, %42, %43 : vector<32x64xi32>
    %c0_i32_13 = arith.constant 0 : i32
    %45 = vector.broadcast %c0_i32_13 : i32 to vector<32x64xi32>
    %46 = arith.cmpi slt, %42, %45 : vector<32x64xi32>
    %c0_i32_14 = arith.constant 0 : i32
    %47 = arith.cmpi slt, %40, %c0_i32_14 : i32
    %48 = vector.broadcast %47 : i1 to vector<32x64xi1>
    %49 = vector.broadcast %48 : vector<32x64xi1> to vector<32x64xi1>
    %50 = arith.xori %46, %49 : vector<32x64xi1>
    %51 = arith.andi %50, %44 : vector<32x64xi1>
    %52 = vector.broadcast %40 : i32 to vector<32x64xi32>
    %53 = arith.addi %42, %52 : vector<32x64xi32>
    %54 = arith.select %51, %53, %42 : vector<32x64xi1>, vector<32x64xi32>
    %c0_i32_15 = arith.constant 0 : i32
    %55 = vector.broadcast %c0_i32_15 : i32 to vector<32x64xi32>
    %56 = arith.cmpi ne, %54, %55 : vector<32x64xi32>
    %57 = arith.extui %56 : vector<32x64xi1> to vector<32x64xi32>
    %58 = arith.sitofp %57 : vector<32x64xi32> to vector<32x64xf32>
    %c16_i32_16 = arith.constant 16 : i32
    %c0_i32_17 = arith.constant 0 : i32
    %59 = arith.cmpi eq, %c16_i32_16, %c0_i32_17 : i32
    %c1_i32_18 = arith.constant 1 : i32
    %60 = arith.select %59, %c1_i32_18, %c16_i32_16 : i32
    %61 = vector.broadcast %60 : i32 to vector<32x64xi32>
    %62 = arith.remsi %38, %61 : vector<32x64xi32>
    %c0_i32_19 = arith.constant 0 : i32
    %63 = vector.broadcast %c0_i32_19 : i32 to vector<32x64xi32>
    %64 = arith.cmpi ne, %62, %63 : vector<32x64xi32>
    %c0_i32_20 = arith.constant 0 : i32
    %65 = vector.broadcast %c0_i32_20 : i32 to vector<32x64xi32>
    %66 = arith.cmpi slt, %62, %65 : vector<32x64xi32>
    %c0_i32_21 = arith.constant 0 : i32
    %67 = arith.cmpi slt, %60, %c0_i32_21 : i32
    %68 = vector.broadcast %67 : i1 to vector<32x64xi1>
    %69 = vector.broadcast %68 : vector<32x64xi1> to vector<32x64xi1>
    %70 = arith.xori %66, %69 : vector<32x64xi1>
    %71 = arith.andi %70, %64 : vector<32x64xi1>
    %72 = vector.broadcast %60 : i32 to vector<32x64xi32>
    %73 = arith.addi %62, %72 : vector<32x64xi32>
    %74 = arith.select %71, %73, %62 : vector<32x64xi1>, vector<32x64xi32>
    %c15_i32 = arith.constant 15 : i32
    %75 = vector.broadcast %c15_i32 : i32 to vector<32x64xi32>
    %76 = arith.cmpi ne, %74, %75 : vector<32x64xi32>
    %77 = arith.extui %76 : vector<32x64xi1> to vector<32x64xi32>
    %78 = arith.sitofp %77 : vector<32x64xi32> to vector<32x64xf32>
    %c0 = arith.constant 0 : index
    %c0_22 = arith.constant 0 : index
    %79 = vector.load %arg1[%c0, %c0_22] : memref<32x64xf32, #tpu.memory_space<vmem>>, vector<32x64xf32>
    %c0_23 = arith.constant 0 : index
    %c0_24 = arith.constant 0 : index
    %80 = vector.load %arg3[%c0_23, %c0_24] : memref<4x64xf32, #tpu.memory_space<vmem>>, vector<4x64xf32>
    %c0_25 = arith.constant 0 : index
    %c0_26 = arith.constant 0 : index
    %c0_27 = arith.constant 0 : index
    %81 = vector.load %arg2[%c0_25, %c0_26, %c0_27] : memref<2x192x64xf32, #tpu.memory_space<vmem>>, vector<1x192x64xf32>
    %82 = vector.shape_cast %81 : vector<1x192x64xf32> to vector<192x64xf32>
    %83 = vector.extract_strided_slice %80 {offsets = [0, 0], sizes = [1, 64], strides = [1, 1]} : vector<4x64xf32> to vector<1x64xf32>
    %84 = vector.extract_strided_slice %80 {offsets = [1, 0], sizes = [1, 64], strides = [1, 1]} : vector<4x64xf32> to vector<1x64xf32>
    %cst_28 = arith.constant 0.000000e+00 : f32
    %85 = vector.broadcast %cst_28 : f32 to vector<1x64xf32>
    %86 = vector.extract_strided_slice %79 {offsets = [0, 0], sizes = [31, 64], strides = [1, 1]} : vector<32x64xf32> to vector<31x64xf32>
    %87 = tpu.concatenate %85, %86 in 0 : vector<1x64xf32>, vector<31x64xf32> -> vector<32x64xf32>
    %88 = arith.mulf %87, %58 : vector<32x64xf32>
    %89 = vector.extract_strided_slice %79 {offsets = [1, 0], sizes = [31, 64], strides = [1, 1]} : vector<32x64xf32> to vector<31x64xf32>
    %90 = tpu.concatenate %89, %85 in 0 : vector<31x64xf32>, vector<1x64xf32> -> vector<32x64xf32>
    %91 = arith.mulf %90, %78 : vector<32x64xf32>
    %92 = tpu.concatenate %88, %79, %91 in 1 : vector<32x64xf32>, vector<32x64xf32>, vector<32x64xf32> -> vector<32x192xf32>
    %cst_29 = arith.constant dense<0.000000e+00> : vector<32x64xf32>
    %93 = tpu.matmul %92, %82, %cst_29 {dimension_numbers = #tpu.dot_dimension_numbers<[1], [0], [0], [1], [0, 0, 1, 1], [], []>} : vector<32x192xf32>, vector<192x64xf32>, vector<32x64xf32> -> vector<32x64xf32>
    %cst_30 = arith.constant dense<0.000000e+00> : vector<64xf32>
    %94 = vector.multi_reduction <add>, %93, %cst_30 [0] : vector<32x64xf32> to vector<64xf32>
    %95 = vector.shape_cast %94 : vector<64xf32> to vector<1x64xf32>
    %cst_31 = arith.constant dense<0.000000e+00> : vector<1x64xf32>
    %96 = tpu.matmul %95, %37, %cst_31 {dimension_numbers = #tpu.dot_dimension_numbers<[1], [0], [0], [1], [0, 0, 1, 1], [], []>} : vector<1x64xf32>, vector<64x64xf32>, vector<1x64xf32> -> vector<1x64xf32>
    %97 = vector.broadcast %96 : vector<1x64xf32> to vector<32x64xf32>
    %98 = arith.subf %93, %97 : vector<32x64xf32>
    %99 = arith.mulf %98, %98 : vector<32x64xf32>
    %cst_32 = arith.constant dense<0.000000e+00> : vector<64xf32>
    %100 = vector.multi_reduction <add>, %99, %cst_32 [0] : vector<32x64xf32> to vector<64xf32>
    %101 = vector.shape_cast %100 : vector<64xf32> to vector<1x64xf32>
    %cst_33 = arith.constant dense<0.000000e+00> : vector<1x64xf32>
    %102 = tpu.matmul %101, %37, %cst_33 {dimension_numbers = #tpu.dot_dimension_numbers<[1], [0], [0], [1], [0, 0, 1, 1], [], []>} : vector<1x64xf32>, vector<64x64xf32>, vector<1x64xf32> -> vector<1x64xf32>
    %cst_34 = arith.constant 9.99999974E-6 : f32
    %103 = vector.broadcast %cst_34 : f32 to vector<1x64xf32>
    %104 = arith.addf %102, %103 : vector<1x64xf32>
    %105 = math.rsqrt %104 : vector<1x64xf32>
    %106 = arith.mulf %83, %105 : vector<1x64xf32>
    %107 = vector.broadcast %106 : vector<1x64xf32> to vector<32x64xf32>
    %108 = arith.mulf %98, %107 : vector<32x64xf32>
    %109 = vector.broadcast %84 : vector<1x64xf32> to vector<32x64xf32>
    %110 = arith.addf %108, %109 : vector<32x64xf32>
    %cst_35 = arith.constant 0.000000e+00 : f32
    %111 = vector.broadcast %cst_35 : f32 to vector<32x64xf32>
    %112 = arith.maximumf %110, %111 : vector<32x64xf32>
    %c1 = arith.constant 1 : index
    %c0_36 = arith.constant 0 : index
    %c0_37 = arith.constant 0 : index
    %113 = vector.load %arg2[%c1, %c0_36, %c0_37] : memref<2x192x64xf32, #tpu.memory_space<vmem>>, vector<1x192x64xf32>
    %114 = vector.shape_cast %113 : vector<1x192x64xf32> to vector<192x64xf32>
    %115 = vector.extract_strided_slice %80 {offsets = [2, 0], sizes = [1, 64], strides = [1, 1]} : vector<4x64xf32> to vector<1x64xf32>
    %116 = vector.extract_strided_slice %80 {offsets = [3, 0], sizes = [1, 64], strides = [1, 1]} : vector<4x64xf32> to vector<1x64xf32>
    %cst_38 = arith.constant 0.000000e+00 : f32
    %117 = vector.broadcast %cst_38 : f32 to vector<1x64xf32>
    %118 = vector.extract_strided_slice %112 {offsets = [0, 0], sizes = [31, 64], strides = [1, 1]} : vector<32x64xf32> to vector<31x64xf32>
    %119 = tpu.concatenate %117, %118 in 0 : vector<1x64xf32>, vector<31x64xf32> -> vector<32x64xf32>
    %120 = arith.mulf %119, %58 : vector<32x64xf32>
    %121 = vector.extract_strided_slice %112 {offsets = [1, 0], sizes = [31, 64], strides = [1, 1]} : vector<32x64xf32> to vector<31x64xf32>
    %122 = tpu.concatenate %121, %117 in 0 : vector<31x64xf32>, vector<1x64xf32> -> vector<32x64xf32>
    %123 = arith.mulf %122, %78 : vector<32x64xf32>
    %124 = tpu.concatenate %120, %112, %123 in 1 : vector<32x64xf32>, vector<32x64xf32>, vector<32x64xf32> -> vector<32x192xf32>
    %cst_39 = arith.constant dense<0.000000e+00> : vector<32x64xf32>
    %125 = tpu.matmul %124, %114, %cst_39 {dimension_numbers = #tpu.dot_dimension_numbers<[1], [0], [0], [1], [0, 0, 1, 1], [], []>} : vector<32x192xf32>, vector<192x64xf32>, vector<32x64xf32> -> vector<32x64xf32>
    %cst_40 = arith.constant dense<0.000000e+00> : vector<64xf32>
    %126 = vector.multi_reduction <add>, %125, %cst_40 [0] : vector<32x64xf32> to vector<64xf32>
    %127 = vector.shape_cast %126 : vector<64xf32> to vector<1x64xf32>
    %cst_41 = arith.constant dense<0.000000e+00> : vector<1x64xf32>
    %128 = tpu.matmul %127, %37, %cst_41 {dimension_numbers = #tpu.dot_dimension_numbers<[1], [0], [0], [1], [0, 0, 1, 1], [], []>} : vector<1x64xf32>, vector<64x64xf32>, vector<1x64xf32> -> vector<1x64xf32>
    %129 = vector.broadcast %128 : vector<1x64xf32> to vector<32x64xf32>
    %130 = arith.subf %125, %129 : vector<32x64xf32>
    %131 = arith.mulf %130, %130 : vector<32x64xf32>
    %cst_42 = arith.constant dense<0.000000e+00> : vector<64xf32>
    %132 = vector.multi_reduction <add>, %131, %cst_42 [0] : vector<32x64xf32> to vector<64xf32>
    %133 = vector.shape_cast %132 : vector<64xf32> to vector<1x64xf32>
    %cst_43 = arith.constant dense<0.000000e+00> : vector<1x64xf32>
    %134 = tpu.matmul %133, %37, %cst_43 {dimension_numbers = #tpu.dot_dimension_numbers<[1], [0], [0], [1], [0, 0, 1, 1], [], []>} : vector<1x64xf32>, vector<64x64xf32>, vector<1x64xf32> -> vector<1x64xf32>
    %cst_44 = arith.constant 9.99999974E-6 : f32
    %135 = vector.broadcast %cst_44 : f32 to vector<1x64xf32>
    %136 = arith.addf %134, %135 : vector<1x64xf32>
    %137 = math.rsqrt %136 : vector<1x64xf32>
    %138 = arith.mulf %115, %137 : vector<1x64xf32>
    %139 = vector.broadcast %138 : vector<1x64xf32> to vector<32x64xf32>
    %140 = arith.mulf %130, %139 : vector<32x64xf32>
    %141 = vector.broadcast %116 : vector<1x64xf32> to vector<32x64xf32>
    %142 = arith.addf %140, %141 : vector<32x64xf32>
    %143 = arith.addf %142, %79 : vector<32x64xf32>
    %cst_45 = arith.constant 0.000000e+00 : f32
    %144 = vector.broadcast %cst_45 : f32 to vector<32x64xf32>
    %145 = arith.maximumf %143, %144 : vector<32x64xf32>
    %c0_46 = arith.constant 0 : index
    %c0_47 = arith.constant 0 : index
    %146 = vector.load %arg4[%c0_46, %c0_47] : memref<32x64xf32, #tpu.memory_space<vmem>>, vector<32x64xf32>
    tpu.vector_store %arg4[%c0_46, %c0_47], %145 {strides = array<i32>} : memref<32x64xf32, #tpu.memory_space<vmem>>, vector<32x64xf32>,
    return
  }
  func.func @transform_0(%arg0: i32) -> (i32, i32) {
    %c0_i32 = arith.constant 0 : i32
    %c0_i32_0 = arith.constant 0 : i32
    %c0_i32_1 = arith.constant 0 : i32
    return %c0_i32, %c0_i32_0 : i32, i32
  }
  func.func @transform_1(%arg0: i32) -> (i32, i32, i32) {
    %c0_i32 = arith.constant 0 : i32
    %c0_i32_0 = arith.constant 0 : i32
    %c0_i32_1 = arith.constant 0 : i32
    %c0_i32_2 = arith.constant 0 : i32
    return %c0_i32, %c0_i32_0, %c0_i32_1 : i32, i32, i32
  }
  func.func @transform_2(%arg0: i32) -> (i32, i32) {
    %c0_i32 = arith.constant 0 : i32
    %c0_i32_0 = arith.constant 0 : i32
    %c0_i32_1 = arith.constant 0 : i32
    return %c0_i32, %c0_i32_0 : i32, i32
  }
  func.func @transform_3(%arg0: i32) -> (i32, i32) {
    %c0_i32 = arith.constant 0 : i32
    %c0_i32_0 = arith.constant 0 : i32
    %c0_i32_1 = arith.constant 0 : i32
    return %c0_i32, %c0_i32_0 : i32, i32
  }
}

</mosaic_0001>

<bundles_post_ra>
// kernel: resblock_forward.1
= control target key start
LH: loop header
LB: loop body
LE: loop exit
PB: predicated region body
PF: predicated region fallthrough
CT: control target
= control target key end

     0   :  { %v1316_v2 = vmov 0.0|0.0   ;;  %s1317_s16 = smov 64   ;;  %vm271_vm0 = vcmask 1046528   ;;  %vm300_vm1 = vcmask 523264   ;;  %v14_v44 = vlaneseq  ;;  %s1782_s0 = inlined_call_operand.vmem [shape: f32[32,64], index: 0, kind: input, shape index: {}]   ;;  %s1783_s1 = inlined_call_operand.vmem [shape: f32[2,192,64], index: 1, kind: input, shape index: {}]   ;;  %s1784_s2 = inlined_call_operand.vmem [shape: f32[4,64], index: 2, kind: input, shape index: {}]   ;;  %s1785_s3 = inlined_call_operand.vmem [shape: f32[32,64], index: 3, kind: output, shape index: {}]  }
   0x1   :  { %v1344_v0 = vld [vmem:[%s1782_s0] sm:$0xff]  ;;  %v1349_v1 = vld [vmem:[%s1782_s0 + $0x10] sm:$0xff]  ;;  %1187 = vmatprep.subr.bf16.mxu0 %v1316_v2  ;;  %1223 = vmatprep.subr.bf16.mxu1 %v1316_v2  ;;  %v1363_v4 = vld [vmem:[%s1782_s0 + $0x8] sm:$0xff]  ;;  %vm254_vm3 = vcmask 1040384   ;;  %v1318_v54 = vmov 0.0  }
   0x2   :  { %288 = vrot.lane.b32.xlu0 %v1344_v0, %s1317_s16  ;;  %292 = vrot.lane.b32.xlu1 %v1349_v1, %s1317_s16  ;;  %v226_v3 = vld [vmem:[%s1783_s1] sm:$0xff]  ;;  %v1368_v5 = vld [vmem:[%s1782_s0 + $0x18] sm:$0xff]  ;;  %v272_v7 = vrot.slane %v1344_v0, 1  ;;  %v273_v11 = vrot.slane %v1363_v4, 1  ;;  %v1461_v45 = vshrl.u32 %v14_v44, 7  ;;  %v255_v50 = vrot.slane %v1344_v0, 7 }
   0x3   :  { %v227_v6 = vld [vmem:[%s1783_s1 + $0x8] sm:$0xff]  ;;  %v228_v9 = vld [vmem:[%s1783_s1 + $0x10] sm:$0xff]  ;;  %v229_v10 = vld [vmem:[%s1783_s1 + $0x18] sm:$0xff]  ;;  %v275_v51 = vrot.slane %v1349_v1, 1  ;;  %v258_v57 = vrot.slane %v1349_v1, 7  ;;  %v256_v62 = vrot.slane %v1363_v4, 7 }
   0x4   :  { %v1188_v8 = vpack.c.bf16 %v227_v6, %v226_v3  ;;  %v274_v12 = vsel %vm271_vm0, %v272_v7, %v273_v11  ;;  %v1191_v13 = vpack.c.bf16 %v229_v10, %v228_v9  ;;  %v230_v14 = vld [vmem:[%s1783_s1 + $0x20] sm:$0xff]  ;;  %v231_v15 = vld [vmem:[%s1783_s1 + $0x28] sm:$0xff]  ;;  %v232_v17 = vld [vmem:[%s1783_s1 + $0x30] sm:$0xff]  ;;  %v16_v46 = vadd.s32 8, %v1461_v45 }
   0x5   :  { %1007 = vmatprep.mubr.msk.f32.mxu0 %vm300_vm1, %v274_v12  ;;  %v1194_v16 = vpack.c.bf16 %v231_v15, %v230_v14  ;;  %v233_v18 = vld [vmem:[%s1783_s1 + $0x38] sm:$0xff]  ;;  %v234_v20 = vld [vmem:[%s1783_s1 + $0x40] sm:$0xff]  ;;  %v235_v21 = vld [vmem:[%s1783_s1 + $0x48] sm:$0xff]  ;;  %v153_v47 = vand.u32 15, %v1461_v45  ;;  %v17_v49 = vadd.s32 16, %v1461_v45  ;;  %v18_v53 = vadd.s32 24, %v1461_v45 }
   0x6   :  { %290 = vrot.lane.b32.xlu0 %v1363_v4, %s1317_s16  ;;  %294 = vrot.lane.b32.xlu1 %v1368_v5, %s1317_s16  ;;  %v1197_v19 = vpack.c.bf16 %v233_v18, %v232_v17  ;;  %v1200_v22 = vpack.c.bf16 %v235_v21, %v234_v20  ;;  %v236_v23 = vld [vmem:[%s1783_s1 + $0x50] sm:$0xff]  ;;  %v237_v24 = vld [vmem:[%s1783_s1 + $0x58] sm:$0xff]  ;;  %v160_v48 = vand.u32 15, %v16_v46  ;;  %v266_v56 = vsel %vm254_vm3, 0.0, %v255_v50 }
   0x7   :  { %1189 = vmatpush1.bf16.msra.mxu0 %v1188_v8  ;;  %v1203_v25 = vpack.c.bf16 %v237_v24, %v236_v23  ;;  %v238_v26 = vld [vmem:[%s1783_s1 + $0x60] sm:$0xff]  ;;  %v239_v27 = vld [vmem:[%s1783_s1 + $0x68] sm:$0xff]  ;;  %v240_v29 = vld [vmem:[%s1783_s1 + $0x70] sm:$0xff]  ;;  %vm197_vm2 = vcmp.ne.s32.totalorder %v153_v47, 0  ;;  %v167_v52 = vand.u32 15, %v17_v49  ;;  %v276_v59 = vsel %vm271_vm0, %v273_v11, %v275_v51 }
   0x8   :  { %1190 = vmatprep.subr.bf16.mxu0 %v1316_v2  ;;  %v1206_v28 = vpack.c.bf16 %v239_v27, %v238_v26  ;;  %v241_v30 = vld [vmem:[%s1783_s1 + $0x78] sm:$0xff]  ;;  %v242_v32 = vld [vmem:[%s1783_s1 + $0x80] sm:$0xff]  ;;  %v243_v33 = vld [vmem:[%s1783_s1 + $0x88] sm:$0xff]  ;;  %vm210_vm4 = vcmp.ne.s32.totalorder %v160_v48, 15  ;;  %v1470_v55 = vsel %vm197_vm2, 1.0, %v1318_v54  ;;  %v174_v61 = vand.u32 15, %v18_v53 }
   0x9   :  { %v1209_v31 = vpack.c.bf16 %v241_v30, %v240_v29  ;;  %v1212_v34 = vpack.c.bf16 %v243_v33, %v242_v32  ;;  %v244_v35 = vld [vmem:[%s1783_s1 + $0x90] sm:$0xff]  ;;  %v245_v36 = vld [vmem:[%s1783_s1 + $0x98] sm:$0xff]  ;;  %v246_v38 = vld [vmem:[%s1783_s1 + $0xa0] sm:$0xff]  ;;  %v1475_v58 = vsel %vm210_vm4, 1.0, %v1318_v54  ;;  %v267_v60 = vmul.f32 %v1470_v55, %v266_v56 }
   0xa   :  { %v1215_v37 = vpack.c.bf16 %v245_v36, %v244_v35  ;;  %v247_v39 = vld [vmem:[%s1783_s1 + $0xa8] sm:$0xff]  ;;  %v248_v41 = vld [vmem:[%s1783_s1 + $0xb0] sm:$0xff]  ;;  %v249_v42 = vld [vmem:[%s1783_s1 + $0xb8] sm:$0xff]  ;;  %vm199_vm5 = vcmp.ne.s32.totalorder %v167_v52, 0  ;;  %v285_v63 = vmul.f32 %v1475_v58, %v276_v59  ;;  %v277_v3 = vrot.slane %v1368_v5, 1 }
   0xb   :  { %1192 = vmatpush1.bf16.msra.mxu0 %v1191_v13  ;;  %v1218_v40 = vpack.c.bf16 %v247_v39, %v246_v38  ;;  %v1221_v43 = vpack.c.bf16 %v249_v42, %v248_v41  ;;  %v1485_v7 = vsel %vm199_vm5, 1.0, %v1318_v54  ;;  %v259_v8 = vsel %vm254_vm3, %v256_v62, %v258_v57 }
   0xc   :  { %1193 = vmatprep.subr.bf16.mxu0 %v1316_v2  ;;  %vm212_vm6 = vcmp.ne.s32.totalorder %v174_v61, 15  ;;  %v257_v10 = vsel %vm254_vm3, %v255_v50, %v256_v62  ;;  %v269_v12 = vmul.f32 %v1485_v7, %v259_v8  ;;  %v260_v13 = vrot.slane %v1368_v5, 7 }
   0xd   :  { %v278_v15 = vsel %vm271_vm0, %v275_v51, %v277_v3  ;;  %v283_v17 = vsel %vm271_vm0, %v277_v3, 0.0  ;;  %v120_v24 = vand.u32 127, %v14_v44  ;;  %v34_v26 = vand.u32 3, %v16_v46 }
   0xe   :  { %v1319_v29 = vmov 0.001953125|0.001953125   ;;  %v41_v30 = vand.u32 3, %v17_v49  ;;  %v19_v32 = vadd.s32 32, %v1461_v45  ;;  %v20_v33 = vadd.s32 40, %v1461_v45 }
   0xf   :  { %1195 = vmatpush1.bf16.msra.mxu0 %v1194_v16  ;;  %v1495_v16 = vsel %vm212_vm6, 1.0, %v1318_v54  ;;  %v125_v27 = vand.u32 3, %v120_v24  ;;  %v22_v38 = vadd.s32 56, %v1461_v45  ;;  %vm1320_vm6 = vmmov 0  }
  0x10   :  { %1196 = vmatprep.subr.bf16.mxu0 %v1316_v2  ;;  %v287_v20 = vmul.f32 %v1495_v16, %v283_v17  ;;  %v55_v35 = vand.u32 3, %v19_v32  ;;  %v62_v36 = vand.u32 3, %v20_v33  ;;  %1127 = vmatprep.mubr.msk.f32.mxu1 %vm1320_vm6, %v1318_v54 }
  0x11   :  { %vm134_vm8 = vcmp.eq.s32.totalorder %v34_v26, %v125_v27  ;;  %vm135_vm10 = vcmp.eq.s32.totalorder %v41_v30, %v125_v27  ;;  %v76_v41 = vand.u32 3, %v22_v38 }
  0x12   :  { %vm137_vm13 = vcmp.eq.s32.totalorder %v55_v35, %v125_v27  ;;  %vm138_vm14 = vcmp.eq.s32.totalorder %v62_v36, %v125_v27 }
  0x13   :  { %1198 = vmatpush1.bf16.msra.mxu0 %v1197_v19  ;;  %vm1534_vm15 = vmpackc.low %vm138_vm14, %vm137_vm13  ;;  %vm140_vm4 = vcmp.eq.s32.totalorder %v76_v41, %v125_v27  ;;  %v1030_v41 = vld [vmem:[%s1783_s1 + $0xc8] sm:$0xff] }
  0x14   :  { %1199 = vmatprep.subr.bf16.mxu0 %v1316_v2 }
  0x17   :  { %1201 = vmatpush1.bf16.msra.mxu0 %v1200_v22  ;;  %v261_v22 = vsel %vm254_vm3, %v258_v57, %v260_v13 }
  0x18   :  { %1202 = vmatprep.subr.bf16.mxu0 %v1316_v2 }
  0x1b   :  { %1204 = vmatpush1.bf16.msra.mxu0 %v1203_v25  ;;  %v27_v25 = vand.u32 3, %v1461_v45 }
  0x1c   :  { %1205 = vmatprep.subr.bf16.mxu0 %v1316_v2 }
  0x1d   :  { %vm133_vm7 = vcmp.eq.s32.totalorder %v27_v25, %v125_v27 }
  0x1e   :  { %vm1506_vm9 = vmpackc.low %vm134_vm8, %vm133_vm7 }
  0x1f   :  { %1207 = vmatpush1.bf16.msra.mxu0 %v1206_v28  ;;  %1225 = vmatpush3.bf16.msk.msra.mxu1 %vm1506_vm9, %v1319_v29 }
  0x20   :  { %1208 = vmatprep.subr.bf16.mxu0 %v1316_v2  ;;  %1226 = vmatprep.subr.bf16.mxu1 %v1316_v2 }
  0x23   :  { %1210 = vmatpush1.bf16.msra.mxu0 %v1209_v31  ;;  %v48_v31 = vand.u32 3, %v18_v53 }
  0x24   :  { %1211 = vmatprep.subr.bf16.mxu0 %v1316_v2 }
  0x25   :  { %vm136_vm11 = vcmp.eq.s32.totalorder %v48_v31, %v125_v27 }
  0x26   :  { %vm1520_vm12 = vmpackc.low %vm136_vm11, %vm135_vm10 }
  0x27   :  { %1213 = vmatpush1.bf16.msra.mxu0 %v1212_v34  ;;  %1228 = vmatpush3.bf16.msk.msra.mxu1 %vm1520_vm12, %v1319_v29 }
  0x28   :  { %1214 = vmatprep.subr.bf16.mxu0 %v1316_v2  ;;  %1229 = vmatprep.subr.bf16.mxu1 %v1316_v2 }
  0x2b   :  { %1216 = vmatpush1.bf16.msra.mxu0 %v1215_v37  ;;  %v21_v37 = vadd.s32 48, %v1461_v45  ;;  %1231 = vmatpush3.bf16.msk.msra.mxu1 %vm1534_vm15, %v1319_v29 }
  0x2c   :  { %1217 = vmatprep.subr.bf16.mxu0 %v1316_v2  ;;  %1232 = vmatprep.subr.bf16.mxu1 %v1316_v2 }
  0x2f   :  { %1219 = vmatpush1.bf16.msra.mxu0 %v1218_v40  ;;  %v69_v40 = vand.u32 3, %v21_v37 }
  0x30   :  { %1220 = vmatprep.subr.bf16.mxu0 %v1316_v2 }
  0x31   :  { %vm139_vm2 = vcmp.eq.s32.totalorder %v69_v40, %v125_v27  ;;  %v1029_v40 = vld [vmem:[%s1783_s1 + $0xc0] sm:$0xff] }
  0x32   :  { %vm1546_vm5 = vmpackc.low %vm140_vm4, %vm139_vm2 }
  0x33   :  { %1222 = vmatpush1.bf16.msra.mxu0 %v1221_v43  ;;  %1234 = vmatpush3.bf16.msk.msra.mxu1 %vm1546_vm5, %v1319_v29 }
  0x34   :  { %1283 = vmatprep.subr.bf16.mxu0 %v1316_v2  ;;  %1235 = vmatprep.subr.bf16.mxu1 %v1316_v2 }
  0x74   :  { %v289_v6 = vpop.permute.xlu0 %288  ;;  %v293_v11 = vpop.permute.xlu1 %292 }
  0x75   :  { %v301_v9 = vsel %vm300_vm1, %v267_v60, %v289_v6  ;;  %v303_v19 = vsel %vm300_vm1, %v269_v12, %v293_v11 }
  0x76   :  { %382 = vmatmul.mubr.f32.vlgmr.msra.gmra.mrb[0].mxu0 %v301_v9 }
  0x77   :  { %1008 = vmatprep.mubr.msk.f32.mxu0 %vm300_vm1, %v285_v63  ;;  %1285 = vmatpush3.bf16.msk.msra.mxu0 %vm1506_vm9, %v1319_v29 }
  0x78   :  { %v291_v14 = vpop.permute.xlu0 %290  ;;  %v295_v21 = vpop.permute.xlu1 %294  ;;  %1286 = vmatprep.subr.bf16.mxu0 %v1316_v2 }
  0x79   :  { %v302_v18 = vsel %vm300_vm1, %v257_v10, %v291_v14  ;;  %v304_v23 = vsel %vm300_vm1, %v261_v22, %v295_v21  ;;  %v1586_v10 = vsub.s32 0, %v1461_v45 }
  0x7a   :  { %387 = vmatmul.mubr.f32.gmra.mrb[2].mxu0 %v302_v18 }
  0x7b   :  { %1009 = vmatprep.mubr.msk.f32.mxu0 %vm300_vm1, %v278_v15  ;;  %1288 = vmatpush3.bf16.msk.msra.mxu0 %vm1520_vm12, %v1319_v29 }
  0x7c   :  { %1289 = vmatprep.subr.bf16.mxu0 %v1316_v2 }
  0x7e   :  { %392 = vmatmul.mubr.f32.gmra.mrb[4].mxu0 %v303_v19 }
  0x7f   :  { %1010 = vmatprep.mubr.msk.f32.mxu0 %vm300_vm1, %v287_v20  ;;  %1291 = vmatpush3.bf16.msk.msra.mxu0 %vm1534_vm15, %v1319_v29 }
  0x80   :  { %1292 = vmatprep.subr.bf16.mxu0 %v1316_v2 }
  0x82   :  { %397 = vmatmul.mubr.f32.gmra.mrb[6].mxu0 %v304_v23 }
  0x83   :  { %1294 = vmatpush3.bf16.msk.msra.mxu0 %vm1546_vm5, %v1319_v29  ;;  %1165 = vmatprep.mubr.msk.f32.mxu0 %vm1320_vm6, %v1318_v54 }
  0x84   :  { %1295 = vmatprep.subr.bf16.mxu0 %v1316_v2 }
 0x149   :  { %v383_v43 = vpop.f32.mrb[0].mxu0 }
 0x14a   :  { %v385_v44 = vpop.f32.mrb[1].mxu0  ;;  %v402_v47 = vsel %vm300_vm1, %v383_v43, 0.0 }
 0x14b   :  { %v1248_v44 = vpack.c.bf16 %v1030_v41, %v1029_v40 }
 0x14d   :  { %v388_v46 = vpop.f32.mrb[2].mxu0 }
 0x14e   :  { %v403_v48 = vsel %vm300_vm1, %v388_v46, 0.0  ;;  %v390_v49 = vpop.f32.mrb[3].mxu0 }
 0x14f   :  { %v404_v50 = vadd.f32 %v403_v48, %v402_v47  ;;  %v1033_v48 = vld [vmem:[%s1783_s1 + $0xe0] sm:$0xff]  ;;  %v1034_v49 = vld [vmem:[%s1783_s1 + $0xe8] sm:$0xff] }
 0x151   :  { %v393_v51 = vpop.f32.mrb[4].mxu0 }
 0x152   :  { %v405_v52 = vsel %vm300_vm1, %v393_v51, 0.0  ;;  %v395_v53 = vpop.f32.mrb[5].mxu0 }
 0x153   :  { %v406_v56 = vadd.f32 %v405_v52, %v404_v50  ;;  %v1254_v50 = vpack.c.bf16 %v1034_v49, %v1033_v48  ;;  %v1036_v52 = vld [vmem:[%s1783_s1 + $0xf8] sm:$0xff] }
 0x155   :  { %v398_v57 = vpop.f32.mrb[6].mxu0 }
 0x156   :  { %v407_v59 = vsel %vm300_vm1, %v398_v57, 0.0  ;;  %v400_v60 = vpop.f32.mrb[7].mxu0 }
 0x157   :  { %v408_v61 = vadd.f32 %v407_v59, %v406_v56  ;;  %v1037_v56 = vld [vmem:[%s1783_s1 + $0x100] sm:$0xff]  ;;  %v1039_v60 = vld [vmem:[%s1783_s1 + $0x110] sm:$0xff] }
 0x159   :  { %v409_v62 = vrot.slane %v408_v61, 4 }
 0x15b   :  { %v410_v63 = vadd.f32 %v409_v62, %v408_v61  ;;  %v1040_v61 = vld [vmem:[%s1783_s1 + $0x118] sm:$0xff] }
 0x15c   :  { %v1263_v62 = vpack.c.bf16 %v1040_v61, %v1039_v60 }
 0x15d   :  { %v411_v3 = vrot.slane %v410_v63, 2 }
 0x15f   :  { %v412_v6 = vadd.f32 %v411_v3, %v410_v63  ;;  %v1041_v63 = vld [vmem:[%s1783_s1 + $0x120] sm:$0xff]  ;;  %v1042_v3 = vld [vmem:[%s1783_s1 + $0x128] sm:$0xff] }
 0x161   :  { %v413_v8 = vrot.slane %v412_v6, 1 }
 0x163   :  { %v414_v9 = vadd.f32 %v413_v8, %v412_v6  ;;  %v1266_v6 = vpack.c.bf16 %v1042_v3, %v1041_v63  ;;  %v1043_v8 = vld [vmem:[%s1783_s1 + $0x130] sm:$0xff] }
 0x165   :  { %1128 = vmatmul.mubr.msk.f32.vlgmr.msra.gmra.mrb[0].mxu1 %vm300_vm1, %v414_v9  ;;  %v1044_v9 = vld [vmem:[%s1783_s1 + $0x138] sm:$0xff] }
 0x166   :  { %1237 = vmatpush3.bf16.msk.msra.mxu1 %vm1506_vm9, %v1319_v29  ;;  %1146 = vmatprep.mubr.msk.f32.mxu1 %vm1320_vm6, %v1318_v54 }
 0x167   :  { %1238 = vmatprep.subr.bf16.mxu1 %v1316_v2 }
 0x16a   :  { %1240 = vmatpush3.bf16.msk.msra.mxu1 %vm1520_vm12, %v1319_v29 }
 0x16b   :  { %1241 = vmatprep.subr.bf16.mxu1 %v1316_v2 }
 0x16e   :  { %1243 = vmatpush3.bf16.msk.msra.mxu1 %vm1534_vm15, %v1319_v29 }
 0x16f   :  { %1244 = vmatprep.subr.bf16.mxu1 %v1316_v2 }
 0x172   :  { %1246 = vmatpush3.bf16.msk.msra.mxu1 %vm1546_vm5, %v1319_v29 }
 0x173   :  { %1247 = vmatprep.subr.bf16.mxu1 %v1316_v2 }
 0x238   :  { %v484_v11 = vpop.f32.mrb[0].mxu1 }
 0x239   :  { %v491_v12 = vrot.slane %v484_v11, %v1586_v10  ;;  %v1129_v13 = vpop.f32.mrb[1].mxu1  ;;  %v1269_v11 = vpack.c.bf16 %v1044_v9, %v1043_v8 }
 0x23a   :  { %v1046_v13 = vld [vmem:[%s1783_s1 + $0x148] sm:$0xff] }
 0x23b   :  { %v1589_v14 = vsub.f32 %v383_v43, %v491_v12  ;;  %v1591_v15 = vsub.f32 %v388_v46, %v491_v12  ;;  %v1593_v17 = vsub.f32 %v393_v51, %v491_v12  ;;  %v1595_v18 = vsub.f32 %v398_v57, %v491_v12  ;;  %v1031_v43 = vld [vmem:[%s1783_s1 + $0xd0] sm:$0xff]  ;;  %v1032_v46 = vld [vmem:[%s1783_s1 + $0xd8] sm:$0xff]  ;;  %v1038_v57 = vld [vmem:[%s1783_s1 + $0x108] sm:$0xff] }
 0x23c   :  { %v1251_v47 = vpack.c.bf16 %v1032_v46, %v1031_v43  ;;  %v1035_v51 = vld [vmem:[%s1783_s1 + $0xf0] sm:$0xff]  ;;  %v1260_v59 = vpack.c.bf16 %v1038_v57, %v1037_v56  ;;  %v1045_v12 = vld [vmem:[%s1783_s1 + $0x140] sm:$0xff] }
 0x23d   :  { %v496_v19 = vmul.f32 %v1589_v14, %v1589_v14  ;;  %v497_v20 = vmul.f32 %v1591_v15, %v1591_v15  ;;  %v498_v21 = vmul.f32 %v1593_v17, %v1593_v17  ;;  %v499_v22 = vmul.f32 %v1595_v18, %v1595_v18 }
 0x23e   :  { %v1257_v53 = vpack.c.bf16 %v1036_v52, %v1035_v51 }
 0x23f   :  { %v500_v23 = vsel %vm300_vm1, %v496_v19, 0.0  ;;  %v501_v24 = vsel %vm300_vm1, %v497_v20, 0.0  ;;  %v503_v26 = vsel %vm300_vm1, %v498_v21, 0.0  ;;  %v505_v30 = vsel %vm300_vm1, %v499_v22, 0.0  ;;  %v1047_v20 = vld [vmem:[%s1783_s1 + $0x150] sm:$0xff]  ;;  %v1048_v21 = vld [vmem:[%s1783_s1 + $0x158] sm:$0xff] }
 0x240   :  { %v502_v25 = vadd.f32 %v501_v24, %v500_v23  ;;  %v1272_v19 = vpack.c.bf16 %v1046_v13, %v1045_v12  ;;  %v1275_v22 = vpack.c.bf16 %v1048_v21, %v1047_v20  ;;  %v1049_v23 = vld [vmem:[%s1783_s1 + $0x160] sm:$0xff]  ;;  %v1050_v24 = vld [vmem:[%s1783_s1 + $0x168] sm:$0xff] }
 0x242   :  { %v504_v27 = vadd.f32 %v503_v26, %v502_v25  ;;  %v1278_v25 = vpack.c.bf16 %v1050_v24, %v1049_v23  ;;  %v1051_v26 = vld [vmem:[%s1783_s1 + $0x170] sm:$0xff] }
 0x244   :  { %v506_v31 = vadd.f32 %v505_v30, %v504_v27  ;;  %v1052_v27 = vld [vmem:[%s1783_s1 + $0x178] sm:$0xff] }
 0x245   :  { %v1281_v30 = vpack.c.bf16 %v1052_v27, %v1051_v26 }
 0x246   :  { %v507_v32 = vrot.slane %v506_v31, 4 }
 0x248   :  { %v508_v33 = vadd.f32 %v507_v32, %v506_v31 }
 0x24a   :  { %v509_v35 = vrot.slane %v508_v33, 2 }
 0x24c   :  { %v510_v36 = vadd.f32 %v509_v35, %v508_v33  ;;  %v1696_v35 = vld [vmem:[%s1784_s2] sm:$0xf] }
 0x24e   :  { %v511_v37 = vrot.slane %v510_v36, 1 }
 0x250   :  { %v512_v38 = vadd.f32 %v511_v37, %v510_v36  ;;  %v598_v36 = vsub.s32 1, %v1461_v45 }
 0x252   :  { %1147 = vmatmul.mubr.msk.f32.vlgmr.msra.gmra.mrb[2].mxu1 %vm300_vm1, %v512_v38  ;;  %v599_v41 = vrot.slane %v1696_v35, %v598_v36 }
 0x253   :  { %1249 = vmatpush1.bf16.msra.mxu1 %v1248_v44 }
 0x254   :  { %1250 = vmatprep.subr.bf16.mxu1 %v1316_v2 }
 0x257   :  { %1252 = vmatpush1.bf16.msra.mxu1 %v1251_v47 }
 0x258   :  { %1253 = vmatprep.subr.bf16.mxu1 %v1316_v2 }
 0x25b   :  { %1255 = vmatpush1.bf16.msra.mxu1 %v1254_v50 }
 0x25c   :  { %1256 = vmatprep.subr.bf16.mxu1 %v1316_v2 }
 0x25f   :  { %1258 = vmatpush1.bf16.msra.mxu1 %v1257_v53 }
 0x260   :  { %1259 = vmatprep.subr.bf16.mxu1 %v1316_v2 }
 0x263   :  { %1261 = vmatpush1.bf16.msra.mxu1 %v1260_v59 }
 0x264   :  { %1262 = vmatprep.subr.bf16.mxu1 %v1316_v2 }
 0x267   :  { %1264 = vmatpush1.bf16.msra.mxu1 %v1263_v62 }
 0x268   :  { %1265 = vmatprep.subr.bf16.mxu1 %v1316_v2 }
 0x26b   :  { %1267 = vmatpush1.bf16.msra.mxu1 %v1266_v6 }
 0x26c   :  { %1268 = vmatprep.subr.bf16.mxu1 %v1316_v2 }
 0x26f   :  { %1270 = vmatpush1.bf16.msra.mxu1 %v1269_v11 }
 0x270   :  { %1271 = vmatprep.subr.bf16.mxu1 %v1316_v2 }
 0x273   :  { %1273 = vmatpush1.bf16.msra.mxu1 %v1272_v19 }
 0x274   :  { %1274 = vmatprep.subr.bf16.mxu1 %v1316_v2 }
 0x277   :  { %1276 = vmatpush1.bf16.msra.mxu1 %v1275_v22 }
 0x278   :  { %1277 = vmatprep.subr.bf16.mxu1 %v1316_v2 }
 0x27b   :  { %1279 = vmatpush1.bf16.msra.mxu1 %v1278_v25 }
 0x27c   :  { %1280 = vmatprep.subr.bf16.mxu1 %v1316_v2 }
 0x27f   :  { %1282 = vmatpush1.bf16.msra.mxu1 %v1281_v30 }
 0x325   :  { %v582_v31 = vpop.f32.mrb[2].mxu1 }
 0x326   :  { %v583_v32 = vadd.f32 1e-05, %v582_v31  ;;  %v1148_v33 = vpop.f32.mrb[3].mxu1 }
 0x328   :  { %1312 = vrsqrt.f32 %v583_v32 }
 0x332   :  { %v1313_v37 = vpop.eup %1312 }
 0x333   :  { %v587_v38 = vmul.f32 %v1313_v37, %v1696_v35 }
 0x335   :  { %v591_v40 = vrot.slane %v587_v38, %v1586_v10 }
 0x337   :  { %v593_v43 = vmul.f32 %v591_v40, %v1591_v15  ;;  %v592_v44 = vmul.f32 %v591_v40, %v1589_v14  ;;  %v595_v46 = vmul.f32 %v591_v40, %v1595_v18  ;;  %v594_v47 = vmul.f32 %v591_v40, %v1593_v17 }
 0x339   :  { %v601_v48 = vadd.f32 %v599_v41, %v593_v43  ;;  %v600_v49 = vadd.f32 %v599_v41, %v592_v44  ;;  %v603_v50 = vadd.f32 %v599_v41, %v595_v46  ;;  %v602_v51 = vadd.f32 %v599_v41, %v594_v47 }
 0x33b   :  { %v605_v52 = vmax.f32 %v601_v48, 0.0  ;;  %v604_v53 = vmax.f32 %v600_v49, 0.0  ;;  %v607_v56 = vmax.f32 %v603_v50, 0.0  ;;  %v606_v57 = vmax.f32 %v602_v51, 0.0 }
 0x33d   :  { %671 = vrot.lane.b32.xlu1 %v605_v52, %s1317_s16  ;;  %669 = vrot.lane.b32.xlu0 %v604_v53, %s1317_s16  ;;  %v637_v59 = vrot.slane %v604_v53, 7  ;;  %v653_v15 = vrot.slane %v604_v53, 1  ;;  %v654_v60 = vrot.slane %v605_v52, 1  ;;  %v640_v14 = vrot.slane %v606_v57, 7 }
 0x33e   :  { %v656_v61 = vrot.slane %v606_v57, 1  ;;  %v638_v18 = vrot.slane %v605_v52, 7  ;;  %v658_v62 = vrot.slane %v607_v56, 1  ;;  %v642_v17 = vrot.slane %v607_v56, 7 }
 0x33f   :  { %v655_v63 = vsel %vm271_vm0, %v653_v15, %v654_v60  ;;  %v648_v12 = vsel %vm254_vm3, 0.0, %v637_v59 }
 0x340   :  { %1053 = vmatprep.mubr.msk.f32.mxu1 %vm300_vm1, %v655_v63  ;;  %v657_v3 = vsel %vm271_vm0, %v654_v60, %v656_v61  ;;  %v639_v6 = vsel %vm254_vm3, %v637_v59, %v638_v18  ;;  %v659_v8 = vsel %vm271_vm0, %v656_v61, %v658_v62  ;;  %v641_v9 = vsel %vm254_vm3, %v638_v18, %v640_v14 }
 0x341   :  { %675 = vrot.lane.b32.xlu1 %v607_v56, %s1317_s16  ;;  %673 = vrot.lane.b32.xlu0 %v606_v57, %s1317_s16  ;;  %v643_v11 = vsel %vm254_vm3, %v640_v14, %v642_v17  ;;  %v649_v13 = vmul.f32 %v1470_v55, %v648_v12  ;;  %v666_v21 = vmul.f32 %v1475_v58, %v657_v3  ;;  %v664_v25 = vsel %vm271_vm0, %v658_v62, 0.0 }
 0x342   :  { %v651_v26 = vmul.f32 %v1485_v7, %v641_v9  ;;  %v668_v27 = vmul.f32 %v1495_v16, %v664_v25 }
 0x3af   :  { %v670_v19 = vpop.permute.xlu0 %669  ;;  %v672_v22 = vpop.permute.xlu1 %671 }
 0x3b0   :  { %v681_v20 = vsel %vm300_vm1, %v649_v13, %v670_v19  ;;  %v682_v23 = vsel %vm300_vm1, %v639_v6, %v672_v22  ;;  %v981_v22 = vsub.s32 3, %v1461_v45 }
 0x3b1   :  { %762 = vmatmul.mubr.f32.vlgmr.msra.gmra.mrb[4].mxu1 %v681_v20 }
 0x3b2   :  { %1054 = vmatprep.mubr.msk.f32.mxu1 %vm300_vm1, %v666_v21 }
 0x3b3   :  { %v674_v24 = vpop.permute.xlu0 %673  ;;  %v676_v30 = vpop.permute.xlu1 %675 }
 0x3b4   :  { %v683_v55 = vsel %vm300_vm1, %v651_v26, %v674_v24  ;;  %v684_v58 = vsel %vm300_vm1, %v643_v11, %v676_v30  ;;  %v973_v24 = vsub.s32 2, %v1461_v45  ;;  %v982_v26 = vrot.slane %v1696_v35, %v981_v22 }
 0x3b5   :  { %767 = vmatmul.mubr.f32.gmra.mrb[6].mxu1 %v682_v23 }
 0x3b6   :  { %1055 = vmatprep.mubr.msk.f32.mxu1 %vm300_vm1, %v659_v8 }
 0x3b9   :  { %772 = vmatmul.mubr.f32.gmra.mrb[8].mxu1 %v683_v55 }
 0x3ba   :  { %1056 = vmatprep.mubr.msk.f32.mxu1 %vm300_vm1, %v668_v27 }
 0x3bd   :  { %777 = vmatmul.mubr.f32.gmra.mrb[10].mxu1 %v684_v58 }
 0x484   :  { %v763_v31 = vpop.f32.mrb[4].mxu1 }
 0x485   :  { %v765_v32 = vpop.f32.mrb[5].mxu1  ;;  %v782_v36 = vsel %vm300_vm1, %v763_v31, 0.0 }
 0x488   :  { %v768_v33 = vpop.f32.mrb[6].mxu1 }
 0x489   :  { %v783_v37 = vsel %vm300_vm1, %v768_v33, 0.0  ;;  %v770_v38 = vpop.f32.mrb[7].mxu1 }
 0x48a   :  { %v784_v7 = vadd.f32 %v783_v37, %v782_v36 }
 0x48c   :  { %v773_v40 = vpop.f32.mrb[8].mxu1 }
 0x48d   :  { %v785_v41 = vsel %vm300_vm1, %v773_v40, 0.0  ;;  %v775_v16 = vpop.f32.mrb[9].mxu1 }
 0x48e   :  { %v786_v43 = vadd.f32 %v785_v41, %v784_v7 }
 0x490   :  { %v778_v44 = vpop.f32.mrb[10].mxu1 }
 0x491   :  { %v787_v46 = vsel %vm300_vm1, %v778_v44, 0.0  ;;  %v780_v47 = vpop.f32.mrb[11].mxu1 }
 0x492   :  { %v788_v48 = vadd.f32 %v787_v46, %v786_v43 }
 0x494   :  { %v789_v49 = vrot.slane %v788_v48, 4 }
 0x496   :  { %v790_v50 = vadd.f32 %v789_v49, %v788_v48 }
 0x498   :  { %v791_v51 = vrot.slane %v790_v50, 2 }
 0x49a   :  { %v792_v52 = vadd.f32 %v791_v51, %v790_v50 }
 0x49c   :  { %v793_v53 = vrot.slane %v792_v52, 1 }
 0x49e   :  { %v794_v56 = vadd.f32 %v793_v53, %v792_v52 }
 0x4a0   :  { %1166 = vmatmul.mubr.msk.f32.vlgmr.msra.gmra.mrb[8].mxu0 %vm300_vm1, %v794_v56 }
 0x4a1   :  { %1297 = vmatpush3.bf16.msk.msra.mxu0 %vm1506_vm9, %v1319_v29  ;;  %1184 = vmatprep.mubr.msk.f32.mxu0 %vm1320_vm6, %v1318_v54 }
 0x4a2   :  { %1298 = vmatprep.subr.bf16.mxu0 %v1316_v2 }
 0x4a5   :  { %1300 = vmatpush3.bf16.msk.msra.mxu0 %vm1520_vm12, %v1319_v29 }
 0x4a6   :  { %1301 = vmatprep.subr.bf16.mxu0 %v1316_v2 }
 0x4a9   :  { %1303 = vmatpush3.bf16.msk.msra.mxu0 %vm1534_vm15, %v1319_v29 }
 0x4aa   :  { %1304 = vmatprep.subr.bf16.mxu0 %v1316_v2 }
 0x4ad   :  { %1306 = vmatpush3.bf16.msk.msra.mxu0 %vm1546_vm5, %v1319_v29 }
 0x573   :  { %v864_v28 = vpop.f32.mrb[8].mxu0 }
 0x574   :  { %v871_v54 = vrot.slane %v864_v28, %v1586_v10  ;;  %v1167_v57 = vpop.f32.mrb[9].mxu0 }
 0x576   :  { %v872_v59 = vsub.f32 %v763_v31, %v871_v54  ;;  %v873_v15 = vsub.f32 %v768_v33, %v871_v54  ;;  %v874_v34 = vsub.f32 %v773_v40, %v871_v54  ;;  %v875_v60 = vsub.f32 %v778_v44, %v871_v54 }
 0x578   :  { %v876_v14 = vmul.f32 %v872_v59, %v872_v59  ;;  %v877_v61 = vmul.f32 %v873_v15, %v873_v15  ;;  %v878_v18 = vmul.f32 %v874_v34, %v874_v34  ;;  %v879_v62 = vmul.f32 %v875_v60, %v875_v60 }
 0x57a   :  { %v880_v39 = vsel %vm300_vm1, %v876_v14, 0.0  ;;  %v881_v2 = vsel %vm300_vm1, %v877_v61, 0.0  ;;  %v883_v42 = vsel %vm300_vm1, %v878_v18, 0.0  ;;  %v885_v63 = vsel %vm300_vm1, %v879_v62, 0.0 }
 0x57b   :  { %v882_v17 = vadd.f32 %v881_v2, %v880_v39 }
 0x57d   :  { %v884_v29 = vadd.f32 %v883_v42, %v882_v17 }
 0x57f   :  { %v886_v10 = vadd.f32 %v885_v63, %v884_v29 }
 0x581   :  { %v887_v3 = vrot.slane %v886_v10, 4 }
 0x583   :  { %v888_v6 = vadd.f32 %v887_v3, %v886_v10 }
 0x585   :  { %v889_v8 = vrot.slane %v888_v6, 2 }
 0x587   :  { %v890_v9 = vadd.f32 %v889_v8, %v888_v6 }
 0x589   :  { %v891_v11 = vrot.slane %v890_v9, 1 }
 0x58b   :  { %v892_v12 = vadd.f32 %v891_v11, %v890_v9 }
 0x58d   :  { %1185 = vmatmul.mubr.msk.f32.vlgmr.msra.gmra.mrb[10].mxu0 %vm300_vm1, %v892_v12 }
 0x660   :  { %v962_v13 = vpop.f32.mrb[10].mxu0 }
 0x661   :  { %v963_v19 = vadd.f32 1e-05, %v962_v13  ;;  %v1186_v20 = vpop.f32.mrb[11].mxu0 }
 0x663   :  { %1314 = vrsqrt.f32 %v963_v19 }
 0x66d   :  { %v1315_v21 = vpop.eup %1314 }
 0x66e   :  { %v968_v23 = vrot.slane %v1315_v21, 6 }
 0x670   :  { %v970_v25 = vmul.f32 %v968_v23, %v1696_v35 }
 0x672   :  { %v974_v55 = vrot.slane %v970_v25, %v973_v24 }
 0x674   :  { %v975_v27 = vmul.f32 %v974_v55, %v872_v59  ;;  %v976_v30 = vmul.f32 %v974_v55, %v873_v15  ;;  %v977_v58 = vmul.f32 %v974_v55, %v874_v34  ;;  %v978_v31 = vmul.f32 %v974_v55, %v875_v60 }
 0x676   :  { %v983_v32 = vadd.f32 %v982_v26, %v975_v27  ;;  %v984_v33 = vadd.f32 %v982_v26, %v976_v30  ;;  %v985_v36 = vadd.f32 %v982_v26, %v977_v58  ;;  %v986_v37 = vadd.f32 %v982_v26, %v978_v31 }
 0x678   :  { %v987_v38 = vadd.f32 %v983_v32, %v1344_v0  ;;  %v988_v7 = vadd.f32 %v984_v33, %v1363_v4  ;;  %v989_v40 = vadd.f32 %v985_v36, %v1349_v1  ;;  %v990_v45 = vadd.f32 %v986_v37, %v1368_v5 }
 0x67a   :  { %v991_v41 = vmax.f32 %v987_v38, 0.0  ;;  %v992_v16 = vmax.f32 %v988_v7, 0.0  ;;  %v993_v35 = vmax.f32 %v989_v40, 0.0  ;;  %v994_v43 = vmax.f32 %v990_v45, 0.0 }
 0x67c   :  { %995 = vst.msk [vmem:[%s1785_s3] sm:$0xff] %vm300_vm1, %v991_v41  ;;  %996 = vst.msk [vmem:[%s1785_s3 + $0x8] sm:$0xff] %vm300_vm1, %v992_v16 }
 0x67d   :  { %997 = vst.msk [vmem:[%s1785_s3 + $0x10] sm:$0xff] %vm300_vm1, %v993_v35  ;;  %998 = vst.msk [vmem:[%s1785_s3 + $0x18] sm:$0xff] %vm300_vm1, %v994_v43 }

</bundles_post_ra>
